<compile_context>
chip_gen: v6e
topology: v6e:2x2x1
jax: 0.10.0
libtpu: 0.0.40
codegen_flags: <defaults>
</compile_context>

<pallas_src>
import math

import jax
import jax.numpy as jnp
import numpy as np
from jax.experimental import pallas as pl
from jax.experimental.pallas import tpu as pltpu

# --- module hyper-parameters (getDecisionBoundary.__init__ / stepAtThreshold / getAccuracy) ---
INITIAL_THRESHOLD = 0.5
LR = 1e-4
T_MIN = 0.2
T_MAX = 0.8
STEP_K = 10.0
STEP_BASE = 1000.0
EPS = 1e-12

_VMEM_INPUT_BUDGET = 16 * 1024 * 1024   # double-buffered preds+targs blocks
_VMEM_LIMIT_BYTES = 40 * 1024 * 1024    # > v5e's 16 MiB default, < v7x's 64 MiB physical


def _choose_tiles(B, C, targs_itemsize):
    """Pick (batch_tile, class_tile) without ever padding the inputs in HBM."""
    # Class (lane) tile: multiples of 128 when C allows tiling, else full extent.
    if C % 128 == 0:
        cands = [t for t in (1024, 512, 256, 128) if C % t == 0]
        # Prefer >= 2 class tiles so the "parallel" axis feeds both v7x TensorCores.
        tc = next((t for t in cands if C // t >= 2), cands[-1])
    else:
        tc = C

    # Batch tile: as large as possible (fewer grid steps, better HBM roofline),
    # bounded by the double-buffered VMEM budget and rounded to the sublane packing
    # granularity of the targs dtype (8 for f32, 16 for bf16, 32 for int8/bool).
    gran = max(8, 32 // max(1, targs_itemsize))
    bytes_per_row = tc * (4 + targs_itemsize) * 2       # x2: double buffering
    cap = max(gran, _VMEM_INPUT_BUDGET // bytes_per_row)
    tb = min(1024, cap, B)
    tb = (tb // gran) * gran
    if tb == 0:
        tb = B          # tiny batch: single full-extent block (legal block shape)
    return tb, tc


def _make_kernel(batch, tb, tc, need_mask, acc_rows):
    """Kernel closure for a static (batch, batch tile, class tile, mask?) config."""
    c = float(STEP_K * math.log(STEP_BASE))   # slope of the soft step
    inv_b = 1.0 / float(batch)

    if acc_rows == 8:
        # vreg-aligned partial sums: pure VALU adds, XLU reduce deferred to finalize.
        def part(a):
            return jnp.sum(a.reshape(tb // 8, 8, tc), axis=0)
    else:
        def part(a):
            return jnp.sum(a, axis=0, keepdims=True)

    def kernel(preds_ref, targs_ref, thr_ref, out_ref,
               s_acc, ys_acc, g_acc, yg_acc, y_acc):
        bi = pl.program_id(1)                 # batch-tile index (reduction axis)
        last = pl.num_programs(1) - 1

        @pl.when(bi == 0)
        def _init():
            s_acc[...] = jnp.zeros_like(s_acc)
            ys_acc[...] = jnp.zeros_like(ys_acc)
            g_acc[...] = jnp.zeros_like(g_acc)
            yg_acc[...] = jnp.zeros_like(yg_acc)
            y_acc[...] = jnp.zeros_like(y_acc)

        x = preds_ref[...]                       # (TB, TC) f32
        y = targs_ref[...].astype(jnp.float32)   # (TB, TC) {0,1}
        t = thr_ref[...]                         # (1, TC)

        # stepAtThreshold + outer sigmoid, each as a single tanh (1 EUP op instead of 2).
        t1 = jnp.tanh((0.5 * c) * (x - t))
        step = 0.5 * (1.0 + t1)
        t2 = jnp.tanh(0.5 * step)
        s = 0.5 * (1.0 + t2)
        # ds/dt = -c * s(1-s) * step(1-step) = -(c/16) * (1 - t1^2) * (1 - t2^2)
        g = (-c / 16.0) * (1.0 - t1 * t1) * (1.0 - t2 * t2)

        def accumulate(s_, g_, y_):
            s_acc[...] += part(s_)
            ys_acc[...] += part(y_ * s_)
            g_acc[...] += part(g_)
            yg_acc[...] += part(y_ * g_)
            y_acc[...] += part(y_)

        if need_mask:
            # Mask math only runs on the single ragged (last) batch tile.
            @pl.when(bi < last)
            def _full_tile():
                accumulate(s, g, y)

            @pl.when(bi == last)
            def _ragged_tile():
                rows = jax.lax.broadcasted_iota(jnp.int32, x.shape, 0) + bi * tb
                valid = rows < batch
                zero = jnp.zeros_like(s)
                # jnp.where (not multiply): OOB garbage may be NaN/Inf.
                accumulate(jnp.where(valid, s, zero),
                           jnp.where(valid, g, zero),
                           jnp.where(valid, y, zero))
        else:
            accumulate(s, g, y)

        @pl.when(bi == last)
        def _finalize():
            sum_s = jnp.sum(s_acc[...], axis=0, keepdims=True)
            sum_ys = jnp.sum(ys_acc[...], axis=0, keepdims=True)
            sum_g = jnp.sum(g_acc[...], axis=0, keepdims=True)
            sum_yg = jnp.sum(yg_acc[...], axis=0, keepdims=True)
            sum_y = jnp.sum(y_acc[...], axis=0, keepdims=True)

            TP = sum_ys * inv_b
            FP = (sum_s - sum_ys) * inv_b                 # (1-y)*s = s - y*s
            mean_y = sum_y * inv_b
            FN = mean_y - TP                              # y*(1-s) = y - y*s
            TN = (1.0 - mean_y) - FP
            A = sum_yg * inv_b                            # dTP/dt (= -dFN/dt)
            Bp = (sum_g - sum_yg) * inv_b                 # dFP/dt (= -dTN/dt)

            num = 4.0 * TP * TN
            den = 4.0 * TN * TP + (TN + TP) * (FP + FN) + EPS
            num_p = 4.0 * (A * TN - Bp * TP)
            den_p = num_p + (A - Bp) * (FP + FN - TN - TP)
            grad = (num_p * den - num * den_p) / (den * den)   # d P4_j / d t_j

            # gradient-ascent step + clamp (matches .add_(lr*grad).clamp(min, max))
            out_ref[...] = jnp.clip(t + LR * grad, T_MIN, T_MAX)

    return kernel


@jax.jit
def decision_boundary_update(preds, targs, thresholds):
    """One forward() call of getDecisionBoundary: returns the updated (C,) thresholds."""
    B, C = preds.shape
    preds = preds.astype(jnp.float32)                 # no-op when already f32
    if targs.dtype.itemsize > 4:
        targs = targs.astype(jnp.float32)
    thr = thresholds.astype(jnp.float32).reshape(1, C)

    tb, tc = _choose_tiles(B, C, targs.dtype.itemsize)
    n_class_tiles = C // tc
    n_batch_tiles = pl.cdiv(B, tb)
    need_mask = (B % tb) != 0
    acc_rows = 8 if tb % 8 == 0 else 1

    kernel = _make_kernel(B, tb, tc, need_mask, acc_rows)

    out = pl.pallas_call(
        kernel,
        out_shape=jax.ShapeDtypeStruct((1, C), jnp.float32),
        grid_spec=pltpu.PrefetchScalarGridSpec(
            num_scalar_prefetch=0,
            grid=(n_class_tiles, n_batch_tiles),
            in_specs=[
                pl.BlockSpec((tb, tc), lambda ci, bi: (bi, ci)),   # preds
                pl.BlockSpec((tb, tc), lambda ci, bi: (bi, ci)),   # targs
                pl.BlockSpec((1, tc), lambda ci, bi: (0, ci)),     # thresholds
            ],
            out_specs=pl.BlockSpec((1, tc), lambda ci, bi: (0, ci)),
            scratch_shapes=[pltpu.VMEM((acc_rows, tc), jnp.float32)
                            for _ in range(5)],
        ),
        compiler_params=pltpu.CompilerParams(
            dimension_semantics=("parallel", "arbitrary"),
            vmem_limit_bytes=_VMEM_LIMIT_BYTES),
    )(preds, targs, thr)

    return out[0, :]


def _reference_update(preds, targs, thresholds):
    """Plain-JAX autodiff reference mirroring the PyTorch .backward() path."""
    c = STEP_K * math.log(STEP_BASE)
    B = preds.shape[0]

    def p4_sum(t):
        s = jax.nn.sigmoid(jax.nn.sigmoid(c * (preds - t[None, :])))
        y = targs
        y_inv = 1.0 - y
        P = y * s
        N = y_inv * s
        TP = jnp.sum(P, axis=0) / B
        FN = jnp.sum(y - P, axis=0) / B
        FP = jnp.sum(N, axis=0) / B
        TN = jnp.sum(y_inv - N, axis=0) / B
        P4 = 4.0 * TP * TN / (4.0 * TN * TP + (TN + TP) * (FP + FN) + EPS)
        return jnp.sum(P4)

    grad = jax.grad(p4_sum)(thresholds)
    return jnp.clip(thresholds + LR * grad, T_MIN, T_MAX)


def _check(preds, targs, thresholds):
    new_thr = decision_boundary_update(preds, targs, thresholds)
    jax.block_until_ready(new_thr)
    ref = _reference_update(preds, targs, thresholds)
    assert new_thr.shape == thresholds.shape
    assert np.allclose(np.asarray(new_thr), np.asarray(ref), rtol=1e-4, atol=1e-5), (
        np.asarray(new_thr), np.asarray(ref))
    return new_thr


if __name__ == "__main__":
    key = jax.random.PRNGKey(0)
    kp, kt, kp2, kt2 = jax.random.split(key, 4)

    # Small case: single block, no batch/class tiling (C not a multiple of 128).
    B, C = 8, 32
    preds = jax.random.normal(kp, (B, C), dtype=jnp.float32)
    targs = (jax.random.uniform(kt, (B, C)) > 0.5).astype(jnp.float32)
    thresholds = jnp.full((C,), INITIAL_THRESHOLD, dtype=jnp.float32)
    _check(preds, targs, thresholds)

    # Second case exercising class tiling + ragged-batch mask path.
    B2, C2 = 50, 256
    preds2 = jax.random.normal(kp2, (B2, C2), dtype=jnp.float32)
    targs2 = (jax.random.uniform(kt2, (B2, C2)) > 0.5).astype(jnp.float32)
    thresholds2 = jnp.full((C2,), INITIAL_THRESHOLD, dtype=jnp.float32)
    _check(preds2, targs2, thresholds2)

    print("KERNEL_OK")
</pallas_src>

<mosaic_0001>
module attributes {stable_mosaic.version = 11 : i64} {
  func.func @kernel(%arg0: i32, %arg1: i32, %arg2: memref<8x32xf32, #tpu.memory_space<vmem>>, %arg3: memref<8x32xf32, #tpu.memory_space<vmem>>, %arg4: memref<1x32xf32, #tpu.memory_space<vmem>>, %arg5: memref<1x32xf32, #tpu.memory_space<vmem>>, %arg6: memref<8x32xf32, #tpu.memory_space<vmem>>, %arg7: memref<8x32xf32, #tpu.memory_space<vmem>>, %arg8: memref<8x32xf32, #tpu.memory_space<vmem>>, %arg9: memref<8x32xf32, #tpu.memory_space<vmem>>, %arg10: memref<8x32xf32, #tpu.memory_space<vmem>>) attributes {dimension_semantics = [#tpu.dimension_semantics<parallel>, #tpu.dimension_semantics<arbitrary>], iteration_bounds = array<i64: 1, 1>, scalar_prefetch = 0 : i64, scratch_operands = 5 : i64, tpu.core_type = #tpu.core_type<tc>, window_params = [{transform_indices = @transform_0, window_bounds = array<i64: 8, 32>}, {transform_indices = @transform_1, window_bounds = array<i64: 8, 32>}, {transform_indices = @transform_2, window_bounds = array<i64: 1, 32>}, {transform_indices = @transform_3, window_bounds = array<i64: 1, 32>}]} {
    %c0_i32 = arith.constant 0 : i32
    %0 = arith.cmpi eq, %arg1, %c0_i32 : i32
    %1 = arith.extui %0 : i1 to i32
    %c0_i32_0 = arith.constant 0 : i32
    %2 = arith.cmpi ne, %1, %c0_i32_0 : i32
    scf.if %2 {
      %cst_41 = arith.constant 0.000000e+00 : f32
      %61 = vector.broadcast %cst_41 : f32 to vector<8x32xf32>
      %c0_42 = arith.constant 0 : index
      %c0_43 = arith.constant 0 : index
      %62 = vector.load %arg6[%c0_42, %c0_43] : memref<8x32xf32, #tpu.memory_space<vmem>>, vector<8x32xf32>
      tpu.vector_store %arg6[%c0_42, %c0_43], %61 {strides = array<i32>} : memref<8x32xf32, #tpu.memory_space<vmem>>, vector<8x32xf32>,
      %cst_44 = arith.constant 0.000000e+00 : f32
      %63 = vector.broadcast %cst_44 : f32 to vector<8x32xf32>
      %c0_45 = arith.constant 0 : index
      %c0_46 = arith.constant 0 : index
      %64 = vector.load %arg7[%c0_45, %c0_46] : memref<8x32xf32, #tpu.memory_space<vmem>>, vector<8x32xf32>
      tpu.vector_store %arg7[%c0_45, %c0_46], %63 {strides = array<i32>} : memref<8x32xf32, #tpu.memory_space<vmem>>, vector<8x32xf32>,
      %cst_47 = arith.constant 0.000000e+00 : f32
      %65 = vector.broadcast %cst_47 : f32 to vector<8x32xf32>
      %c0_48 = arith.constant 0 : index
      %c0_49 = arith.constant 0 : index
      %66 = vector.load %arg8[%c0_48, %c0_49] : memref<8x32xf32, #tpu.memory_space<vmem>>, vector<8x32xf32>
      tpu.vector_store %arg8[%c0_48, %c0_49], %65 {strides = array<i32>} : memref<8x32xf32, #tpu.memory_space<vmem>>, vector<8x32xf32>,
      %cst_50 = arith.constant 0.000000e+00 : f32
      %67 = vector.broadcast %cst_50 : f32 to vector<8x32xf32>
      %c0_51 = arith.constant 0 : index
      %c0_52 = arith.constant 0 : index
      %68 = vector.load %arg9[%c0_51, %c0_52] : memref<8x32xf32, #tpu.memory_space<vmem>>, vector<8x32xf32>
      tpu.vector_store %arg9[%c0_51, %c0_52], %67 {strides = array<i32>} : memref<8x32xf32, #tpu.memory_space<vmem>>, vector<8x32xf32>,
      %cst_53 = arith.constant 0.000000e+00 : f32
      %69 = vector.broadcast %cst_53 : f32 to vector<8x32xf32>
      %c0_54 = arith.constant 0 : index
      %c0_55 = arith.constant 0 : index
      %70 = vector.load %arg10[%c0_54, %c0_55] : memref<8x32xf32, #tpu.memory_space<vmem>>, vector<8x32xf32>
      tpu.vector_store %arg10[%c0_54, %c0_55], %69 {strides = array<i32>} : memref<8x32xf32, #tpu.memory_space<vmem>>, vector<8x32xf32>,
    } else {
    }
    %c0 = arith.constant 0 : index
    %c0_1 = arith.constant 0 : index
    %3 = vector.load %arg2[%c0, %c0_1] : memref<8x32xf32, #tpu.memory_space<vmem>>, vector<8x32xf32>
    %c0_2 = arith.constant 0 : index
    %c0_3 = arith.constant 0 : index
    %4 = vector.load %arg3[%c0_2, %c0_3] : memref<8x32xf32, #tpu.memory_space<vmem>>, vector<8x32xf32>
    %c0_4 = arith.constant 0 : index
    %c0_5 = arith.constant 0 : index
    %5 = vector.load %arg4[%c0_4, %c0_5] : memref<1x32xf32, #tpu.memory_space<vmem>>, vector<1x32xf32>
    %6 = vector.broadcast %5 : vector<1x32xf32> to vector<8x32xf32>
    %7 = arith.subf %3, %6 : vector<8x32xf32>
    %cst = arith.constant 34.5387764 : f32
    %8 = vector.broadcast %cst : f32 to vector<8x32xf32>
    %9 = arith.mulf %8, %7 : vector<8x32xf32>
    %10 = math.tanh %9 : vector<8x32xf32>
    %cst_6 = arith.constant 1.000000e+00 : f32
    %11 = vector.broadcast %cst_6 : f32 to vector<8x32xf32>
    %12 = arith.addf %11, %10 : vector<8x32xf32>
    %cst_7 = arith.constant 5.000000e-01 : f32
    %13 = vector.broadcast %cst_7 : f32 to vector<8x32xf32>
    %14 = arith.mulf %13, %12 : vector<8x32xf32>
    %cst_8 = arith.constant 5.000000e-01 : f32
    %15 = vector.broadcast %cst_8 : f32 to vector<8x32xf32>
    %16 = arith.mulf %15, %14 : vector<8x32xf32>
    %17 = math.tanh %16 : vector<8x32xf32>
    %cst_9 = arith.constant 1.000000e+00 : f32
    %18 = vector.broadcast %cst_9 : f32 to vector<8x32xf32>
    %19 = arith.addf %18, %17 : vector<8x32xf32>
    %cst_10 = arith.constant 5.000000e-01 : f32
    %20 = vector.broadcast %cst_10 : f32 to vector<8x32xf32>
    %21 = arith.mulf %20, %19 : vector<8x32xf32>
    %22 = arith.mulf %10, %10 : vector<8x32xf32>
    %cst_11 = arith.constant 1.000000e+00 : f32
    %23 = vector.broadcast %cst_11 : f32 to vector<8x32xf32>
    %24 = arith.subf %23, %22 : vector<8x32xf32>
    %cst_12 = arith.constant -4.31734705 : f32
    %25 = vector.broadcast %cst_12 : f32 to vector<8x32xf32>
    %26 = arith.mulf %25, %24 : vector<8x32xf32>
    %27 = arith.mulf %17, %17 : vector<8x32xf32>
    %cst_13 = arith.constant 1.000000e+00 : f32
    %28 = vector.broadcast %cst_13 : f32 to vector<8x32xf32>
    %29 = arith.subf %28, %27 : vector<8x32xf32>
    %30 = arith.mulf %26, %29 : vector<8x32xf32>
    %c0_14 = arith.constant 0 : index
    %c0_15 = arith.constant 0 : index
    %31 = vector.load %arg6[%c0_14, %c0_15] : memref<8x32xf32, #tpu.memory_space<vmem>>, vector<8x32xf32>
    %32 = vector.shape_cast %21 : vector<8x32xf32> to vector<1x8x32xf32>
    %cst_16 = arith.constant dense<0.000000e+00> : vector<8x32xf32>
    %33 = vector.multi_reduction <add>, %32, %cst_16 [0] : vector<1x8x32xf32> to vector<8x32xf32>
    %34 = arith.addf %31, %33 : vector<8x32xf32>
    %c0_17 = arith.constant 0 : index
    %c0_18 = arith.constant 0 : index
    %35 = vector.load %arg6[%c0_17, %c0_18] : memref<8x32xf32, #tpu.memory_space<vmem>>, vector<8x32xf32>
    tpu.vector_store %arg6[%c0_17, %c0_18], %34 {strides = array<i32>} : memref<8x32xf32, #tpu.memory_space<vmem>>, vector<8x32xf32>,
    %c0_19 = arith.constant 0 : index
    %c0_20 = arith.constant 0 : index
    %36 = vector.load %arg7[%c0_19, %c0_20] : memref<8x32xf32, #tpu.memory_space<vmem>>, vector<8x32xf32>
    %37 = arith.mulf %4, %21 : vector<8x32xf32>
    %38 = vector.shape_cast %37 : vector<8x32xf32> to vector<1x8x32xf32>
    %cst_21 = arith.constant dense<0.000000e+00> : vector<8x32xf32>
    %39 = vector.multi_reduction <add>, %38, %cst_21 [0] : vector<1x8x32xf32> to vector<8x32xf32>
    %40 = arith.addf %36, %39 : vector<8x32xf32>
    %c0_22 = arith.constant 0 : index
    %c0_23 = arith.constant 0 : index
    %41 = vector.load %arg7[%c0_22, %c0_23] : memref<8x32xf32, #tpu.memory_space<vmem>>, vector<8x32xf32>
    tpu.vector_store %arg7[%c0_22, %c0_23], %40 {strides = array<i32>} : memref<8x32xf32, #tpu.memory_space<vmem>>, vector<8x32xf32>,
    %c0_24 = arith.constant 0 : index
    %c0_25 = arith.constant 0 : index
    %42 = vector.load %arg8[%c0_24, %c0_25] : memref<8x32xf32, #tpu.memory_space<vmem>>, vector<8x32xf32>
    %43 = vector.shape_cast %30 : vector<8x32xf32> to vector<1x8x32xf32>
    %cst_26 = arith.constant dense<0.000000e+00> : vector<8x32xf32>
    %44 = vector.multi_reduction <add>, %43, %cst_26 [0] : vector<1x8x32xf32> to vector<8x32xf32>
    %45 = arith.addf %42, %44 : vector<8x32xf32>
    %c0_27 = arith.constant 0 : index
    %c0_28 = arith.constant 0 : index
    %46 = vector.load %arg8[%c0_27, %c0_28] : memref<8x32xf32, #tpu.memory_space<vmem>>, vector<8x32xf32>
    tpu.vector_store %arg8[%c0_27, %c0_28], %45 {strides = array<i32>} : memref<8x32xf32, #tpu.memory_space<vmem>>, vector<8x32xf32>,
    %c0_29 = arith.constant 0 : index
    %c0_30 = arith.constant 0 : index
    %47 = vector.load %arg9[%c0_29, %c0_30] : memref<8x32xf32, #tpu.memory_space<vmem>>, vector<8x32xf32>
    %48 = arith.mulf %4, %30 : vector<8x32xf32>
    %49 = vector.shape_cast %48 : vector<8x32xf32> to vector<1x8x32xf32>
    %cst_31 = arith.constant dense<0.000000e+00> : vector<8x32xf32>
    %50 = vector.multi_reduction <add>, %49, %cst_31 [0] : vector<1x8x32xf32> to vector<8x32xf32>
    %51 = arith.addf %47, %50 : vector<8x32xf32>
    %c0_32 = arith.constant 0 : index
    %c0_33 = arith.constant 0 : index
    %52 = vector.load %arg9[%c0_32, %c0_33] : memref<8x32xf32, #tpu.memory_space<vmem>>, vector<8x32xf32>
    tpu.vector_store %arg9[%c0_32, %c0_33], %51 {strides = array<i32>} : memref<8x32xf32, #tpu.memory_space<vmem>>, vector<8x32xf32>,
    %c0_34 = arith.constant 0 : index
    %c0_35 = arith.constant 0 : index
    %53 = vector.load %arg10[%c0_34, %c0_35] : memref<8x32xf32, #tpu.memory_space<vmem>>, vector<8x32xf32>
    %54 = vector.shape_cast %4 : vector<8x32xf32> to vector<1x8x32xf32>
    %cst_36 = arith.constant dense<0.000000e+00> : vector<8x32xf32>
    %55 = vector.multi_reduction <add>, %54, %cst_36 [0] : vector<1x8x32xf32> to vector<8x32xf32>
    %56 = arith.addf %53, %55 : vector<8x32xf32>
    %c0_37 = arith.constant 0 : index
    %c0_38 = arith.constant 0 : index
    %57 = vector.load %arg10[%c0_37, %c0_38] : memref<8x32xf32, #tpu.memory_space<vmem>>, vector<8x32xf32>
    tpu.vector_store %arg10[%c0_37, %c0_38], %56 {strides = array<i32>} : memref<8x32xf32, #tpu.memory_space<vmem>>, vector<8x32xf32>,
    %c0_i32_39 = arith.constant 0 : i32
    %58 = arith.cmpi eq, %arg1, %c0_i32_39 : i32
    %59 = arith.extui %58 : i1 to i32
    %c0_i32_40 = arith.constant 0 : i32
    %60 = arith.cmpi ne, %59, %c0_i32_40 : i32
    scf.if %60 {
      %c0_41 = arith.constant 0 : index
      %c0_42 = arith.constant 0 : index
      %61 = vector.load %arg6[%c0_41, %c0_42] : memref<8x32xf32, #tpu.memory_space<vmem>>, vector<8x32xf32>
      %cst_43 = arith.constant dense<0.000000e+00> : vector<32xf32>
      %62 = vector.multi_reduction <add>, %61, %cst_43 [0] : vector<8x32xf32> to vector<32xf32>
      %63 = vector.shape_cast %62 : vector<32xf32> to vector<1x32xf32>
      %c0_44 = arith.constant 0 : index
      %c0_45 = arith.constant 0 : index
      %64 = vector.load %arg7[%c0_44, %c0_45] : memref<8x32xf32, #tpu.memory_space<vmem>>, vector<8x32xf32>
      %cst_46 = arith.constant dense<0.000000e+00> : vector<32xf32>
      %65 = vector.multi_reduction <add>, %64, %cst_46 [0] : vector<8x32xf32> to vector<32xf32>
      %66 = vector.shape_cast %65 : vector<32xf32> to vector<1x32xf32>
      %c0_47 = arith.constant 0 : index
      %c0_48 = arith.constant 0 : index
      %67 = vector.load %arg8[%c0_47, %c0_48] : memref<8x32xf32, #tpu.memory_space<vmem>>, vector<8x32xf32>
      %cst_49 = arith.constant dense<0.000000e+00> : vector<32xf32>
      %68 = vector.multi_reduction <add>, %67, %cst_49 [0] : vector<8x32xf32> to vector<32xf32>
      %69 = vector.shape_cast %68 : vector<32xf32> to vector<1x32xf32>
      %c0_50 = arith.constant 0 : index
      %c0_51 = arith.constant 0 : index
      %70 = vector.load %arg9[%c0_50, %c0_51] : memref<8x32xf32, #tpu.memory_space<vmem>>, vector<8x32xf32>
      %cst_52 = arith.constant dense<0.000000e+00> : vector<32xf32>
      %71 = vector.multi_reduction <add>, %70, %cst_52 [0] : vector<8x32xf32> to vector<32xf32>
      %72 = vector.shape_cast %71 : vector<32xf32> to vector<1x32xf32>
      %c0_53 = arith.constant 0 : index
      %c0_54 = arith.constant 0 : index
      %73 = vector.load %arg10[%c0_53, %c0_54] : memref<8x32xf32, #tpu.memory_space<vmem>>, vector<8x32xf32>
      %cst_55 = arith.constant dense<0.000000e+00> : vector<32xf32>
      %74 = vector.multi_reduction <add>, %73, %cst_55 [0] : vector<8x32xf32> to vector<32xf32>
      %75 = vector.shape_cast %74 : vector<32xf32> to vector<1x32xf32>
      %cst_56 = arith.constant 1.250000e-01 : f32
      %76 = vector.broadcast %cst_56 : f32 to vector<1x32xf32>
      %77 = arith.mulf %66, %76 : vector<1x32xf32>
      %78 = arith.subf %63, %66 : vector<1x32xf32>
      %cst_57 = arith.constant 1.250000e-01 : f32
      %79 = vector.broadcast %cst_57 : f32 to vector<1x32xf32>
      %80 = arith.mulf %78, %79 : vector<1x32xf32>
      %cst_58 = arith.constant 1.250000e-01 : f32
      %81 = vector.broadcast %cst_58 : f32 to vector<1x32xf32>
      %82 = arith.mulf %75, %81 : vector<1x32xf32>
      %83 = arith.subf %82, %77 : vector<1x32xf32>
      %cst_59 = arith.constant 1.000000e+00 : f32
      %84 = vector.broadcast %cst_59 : f32 to vector<1x32xf32>
      %85 = arith.subf %84, %82 : vector<1x32xf32>
      %86 = arith.subf %85, %80 : vector<1x32xf32>
      %cst_60 = arith.constant 1.250000e-01 : f32
      %87 = vector.broadcast %cst_60 : f32 to vector<1x32xf32>
      %88 = arith.mulf %72, %87 : vector<1x32xf32>
      %89 = arith.subf %69, %72 : vector<1x32xf32>
      %cst_61 = arith.constant 1.250000e-01 : f32
      %90 = vector.broadcast %cst_61 : f32 to vector<1x32xf32>
      %91 = arith.mulf %89, %90 : vector<1x32xf32>
      %cst_62 = arith.constant 4.000000e+00 : f32
      %92 = vector.broadcast %cst_62 : f32 to vector<1x32xf32>
      %93 = arith.mulf %92, %77 : vector<1x32xf32>
      %94 = arith.mulf %93, %86 : vector<1x32xf32>
      %cst_63 = arith.constant 4.000000e+00 : f32
      %95 = vector.broadcast %cst_63 : f32 to vector<1x32xf32>
      %96 = arith.mulf %95, %86 : vector<1x32xf32>
      %97 = arith.mulf %96, %77 : vector<1x32xf32>
      %98 = arith.addf %86, %77 : vector<1x32xf32>
      %99 = arith.addf %80, %83 : vector<1x32xf32>
      %100 = arith.mulf %98, %99 : vector<1x32xf32>
      %101 = arith.addf %97, %100 : vector<1x32xf32>
      %cst_64 = arith.constant 9.99999996E-13 : f32
      %102 = vector.broadcast %cst_64 : f32 to vector<1x32xf32>
      %103 = arith.addf %101, %102 : vector<1x32xf32>
      %104 = arith.mulf %88, %86 : vector<1x32xf32>
      %105 = arith.mulf %91, %77 : vector<1x32xf32>
      %106 = arith.subf %104, %105 : vector<1x32xf32>
      %cst_65 = arith.constant 4.000000e+00 : f32
      %107 = vector.broadcast %cst_65 : f32 to vector<1x32xf32>
      %108 = arith.mulf %107, %106 : vector<1x32xf32>
      %109 = arith.subf %88, %91 : vector<1x32xf32>
      %110 = arith.addf %80, %83 : vector<1x32xf32>
      %111 = arith.subf %110, %86 : vector<1x32xf32>
      %112 = arith.subf %111, %77 : vector<1x32xf32>
      %113 = arith.mulf %109, %112 : vector<1x32xf32>
      %114 = arith.addf %108, %113 : vector<1x32xf32>
      %115 = arith.mulf %108, %103 : vector<1x32xf32>
      %116 = arith.mulf %94, %114 : vector<1x32xf32>
      %117 = arith.subf %115, %116 : vector<1x32xf32>
      %118 = arith.mulf %103, %103 : vector<1x32xf32>
      %119 = arith.divf %117, %118 : vector<1x32xf32>
      %cst_66 = arith.constant 9.99999974E-5 : f32
      %120 = vector.broadcast %cst_66 : f32 to vector<1x32xf32>
      %121 = arith.mulf %120, %119 : vector<1x32xf32>
      %122 = arith.addf %5, %121 : vector<1x32xf32>
      %cst_67 = arith.constant 2.000000e-01 : f32
      %cst_68 = arith.constant 8.000000e-01 : f32
      %123 = vector.broadcast %cst_67 : f32 to vector<1x32xf32>
      %124 = arith.maximumf %123, %122 : vector<1x32xf32>
      %125 = vector.broadcast %cst_68 : f32 to vector<1x32xf32>
      %126 = arith.minimumf %125, %124 : vector<1x32xf32>
      %c0_69 = arith.constant 0 : index
      %c0_70 = arith.constant 0 : index
      %127 = vector.load %arg5[%c0_69, %c0_70] : memref<1x32xf32, #tpu.memory_space<vmem>>, vector<1x32xf32>
      tpu.vector_store %arg5[%c0_69, %c0_70], %126 {strides = array<i32>} : memref<1x32xf32, #tpu.memory_space<vmem>>, vector<1x32xf32>,
    } else {
    }
    return
  }
  func.func @transform_0(%arg0: i32, %arg1: i32) -> (i32, i32) {
    %c0_i32 = arith.constant 0 : i32
    return %arg1, %arg0 : i32, i32
  }
  func.func @transform_1(%arg0: i32, %arg1: i32) -> (i32, i32) {
    %c0_i32 = arith.constant 0 : i32
    return %arg1, %arg0 : i32, i32
  }
  func.func @transform_2(%arg0: i32, %arg1: i32) -> (i32, i32) {
    %c0_i32 = arith.constant 0 : i32
    %c0_i32_0 = arith.constant 0 : i32
    return %c0_i32, %arg0 : i32, i32
  }
  func.func @transform_3(%arg0: i32, %arg1: i32) -> (i32, i32) {
    %c0_i32 = arith.constant 0 : i32
    %c0_i32_0 = arith.constant 0 : i32
    return %c0_i32, %arg0 : i32, i32
  }
}

</mosaic_0001>

<bundles_post_ra>
// kernel: decision_boundary_update.1
= control target key start
LH: loop header
LB: loop body
LE: loop exit
PB: predicated region body
PF: predicated region fallthrough
CT: control target
= control target key end

     0   :  { %8 = vsyncpa [#allocation8], 0  ;;  %s326_s0 = inlined_call_operand.hbm [shape: f32[8,32], index: 0, kind: input, shape index: {}]   ;;  %s327_s1 = inlined_call_operand.hbm [shape: f32[8,32], index: 1, kind: input, shape index: {}]   ;;  %s328_s2 = inlined_call_operand.vmem [shape: f32[1,32], index: 2, kind: input, shape index: {}]   ;;  %s329_s3 = inlined_call_operand.hbm [shape: f32[1,32], index: 3, kind: output, shape index: {}]  }
   0x1   :  { %9 = vsyncpa [#allocation11], 0 }
   0x2   :  { %10 = vsyncpa [#allocation9], 0  ;;  %s271_s12 = smov [#allocation7]   ;;  %s272_s14 = smov [#allocation10]  }
   0x3   :  { %s17_s13 = sshll.u32 %s271_s12, 4  ;;  %s27_s15 = sshll.u32 %s272_s14, 4  ;;  %s18_s13 = int_to_ptr.vmem [resolvable:$true] %s17_s13  ;;  %s28_s15 = int_to_ptr.vmem [resolvable:$true] %s27_s15 }
   0x4   :  { %s213_s16 = scalar_lea.vmem %s18_s13, 128  ;;  %p218_p1 = scmp.lt.s32.totalorder %s18_s13, %s18_s13 }
   0x5   :  { %p214_p0 = scmp.ne.s32.totalorder %s18_s13, %s213_s16  ;;  %p219_p2 = scmp.lt.s32.totalorder %s213_s16, %s213_s16 }
   0x7   :  { %p220_p3 = por %p219_p2, %p218_p1 }
   0x9   :  { %p221_p4 = pnand %p220_p3, %p214_p0 }
   0xb   :  { %224 = shalt.err (!%p221_p4)
}
   0xc   :  { %20 = dma.hbm_to_vmem [thread:$0]  %s326_s0, 128, %s18_s13, [#allocation8]  }
   0xd   :  { %s233_s19 = scalar_lea.vmem %s28_s15, 128  ;;  %p238_p6 = scmp.lt.s32.totalorder %s28_s15, %s28_s15 }
   0xe   :  { %p234_p5 = scmp.ne.s32.totalorder %s28_s15, %s233_s19  ;;  %p239_p7 = scmp.lt.s32.totalorder %s233_s19, %s233_s19 }
  0x10   :  { %p240_p8 = por %p239_p7, %p238_p6 }
  0x12   :  { %p241_p9 = pnand %p240_p8, %p234_p5 }
  0x14   :  { %244 = shalt.err (!%p241_p9)
}
  0x15   :  { %30 = dma.hbm_to_vmem [thread:$0]  %s327_s1, 128, %s28_s15, [#allocation11]  }
  0x16   :  { %265 = dma.done.wait [#allocation8], 128  }
  0x17   :  { %266 = vsyncadd [#allocation8], 4294967168 }
  0x18   :  { %267 = dma.done.wait [#allocation11], 128  }
  0x19   :  { %268 = vsyncadd [#allocation11], 4294967168  ;;  %vm43_vm0 = vcmask 261120   ;;  %v53_v0 = vlaneseq  ;;  %v273_v1 = vmov 0.0   ;;  %v50_v4 = vld [vmem:[#allocation10] sm:$0xff]  ;;  %v49_v5 = vld [vmem:[#allocation7] sm:$0xff] }
  0x1a   :  { %48 = vst.msk [vmem:[#allocation6] sm:$0xff] %vm43_vm0, %v273_v1  ;;  %44 = vst.msk [vmem:[#allocation2] sm:$0xff] %vm43_vm0, %v273_v1  ;;  %v309_v6 = vld [vmem:[%s328_s2] sm:$0x1]  ;;  %s274_s2 = smov [#allocation12]   ;;  %vm177_vm1 = vcmask 253952  }
  0x1b   :  { %45 = vst.msk [vmem:[#allocation3] sm:$0xff] %vm43_vm0, %v273_v1  ;;  %46 = vst.msk [vmem:[#allocation4] sm:$0xff] %vm43_vm0, %v273_v1  ;;  %v54_v2 = vshrl.u32 %v53_v0, 7  ;;  %s185_s22 = sshll.u32 %s274_s2, 4  ;;  %s186_s22 = int_to_ptr.vmem [resolvable:$true] %s185_s22 }
  0x1c   :  { %47 = vst.msk [vmem:[#allocation5] sm:$0xff] %vm43_vm0, %v273_v1  ;;  %s245_s23 = scalar_lea.vmem %s186_s22, 16  ;;  %s249_s24 = scalar_lea.vmem %s186_s22, 32 }
  0x1d   :  { %v55_v3 = vsub.s32 0, %v54_v2  ;;  %p246_p10 = scmp.ne.s32.totalorder %s186_s22, %s245_s23  ;;  %p250_p11 = scmp.lt.s32.totalorder %s186_s22, %s186_s22 }
  0x1e   :  { %p251_p12 = scmp.lt.s32.totalorder %s249_s24, %s245_s23 }
  0x1f   :  { %v56_v8 = vrot.slane %v309_v6, %v55_v3 }
  0x20   :  { %p252_p13 = por %p251_p12, %p250_p11 }
  0x21   :  { %v92_v7 = vld [vmem:[#allocation6] sm:$0xff]  ;;  %v58_v10 = vsub.f32 %v49_v5, %v56_v8 }
  0x22   :  { %v94_v9 = vadd.f32 %v92_v7, %v50_v4  ;;  %v73_v24 = vld [vmem:[#allocation2] sm:$0xff]  ;;  %v78_v28 = vld [vmem:[#allocation3] sm:$0xff]  ;;  %v83_v29 = vld [vmem:[#allocation4] sm:$0xff]  ;;  %p253_p0 = pnand %p252_p13, %p246_p10 }
  0x23   :  { %v59_v11 = vmul.f32 34.538776, %v58_v10  ;;  %v87_v33 = vld [vmem:[#allocation5] sm:$0xff] }
  0x24   :  { %95 = vst.msk [vmem:[#allocation6] sm:$0xff] %vm43_vm0, %v94_v9 }
  0x25   :  { %199 = vtanh.f32 %v59_v11 }
  0x2b   :  { %v131_v18 = vld [vmem:[#allocation6] sm:$0xff] }
  0x2c   :  { %v132_v20 = vsel %vm43_vm0, %v131_v18, 0.0 }
  0x2d   :  { %v133_v27 = vrot.slane %v132_v20, 4 }
  0x2f   :  { %v134_v37 = vadd.f32 %v133_v27, %v132_v20 }
  0x31   :  { %v135_v39 = vrot.slane %v134_v37, 2 }
  0x32   :  { %v200_v12 = vpop.eup %199 }
  0x33   :  { %v61_v13 = vadd.f32 1.0, %v200_v12  ;;  %v67_v16 = vmul.f32 %v200_v12, %v200_v12  ;;  %v136_v42 = vadd.f32 %v135_v39, %v134_v37 }
  0x35   :  { %v62_v14 = vmul.f32 0.5, %v61_v13  ;;  %v68_v17 = vsub.f32 1.0, %v67_v16  ;;  %v137_v53 = vrot.slane %v136_v42, 1 }
  0x37   :  { %v63_v15 = vmul.f32 0.5, %v62_v14  ;;  %v69_v22 = vmul.f32 -4.317347, %v68_v17  ;;  %v138_v62 = vadd.f32 %v137_v53, %v136_v42 }
  0x39   :  { %201 = vtanh.f32 %v63_v15  ;;  %v142_v7 = vmul.f32 0.125, %v138_v62 }
  0x3b   :  { %v144_v17 = vsub.f32 1.0, %v142_v7 }
  0x46   :  { %v202_v19 = vpop.eup %201 }
  0x47   :  { %v65_v21 = vadd.f32 1.0, %v202_v19  ;;  %v70_v23 = vmul.f32 %v202_v19, %v202_v19 }
  0x49   :  { %v66_v25 = vmul.f32 0.5, %v65_v21  ;;  %v71_v26 = vsub.f32 1.0, %v70_v23 }
  0x4b   :  { %v75_v30 = vadd.f32 %v73_v24, %v66_v25  ;;  %v79_v31 = vmul.f32 %v66_v25, %v50_v4  ;;  %v72_v32 = vmul.f32 %v71_v26, %v69_v22 }
  0x4d   :  { %77 = vst.msk [vmem:[#allocation2] sm:$0xff] %vm43_vm0, %v75_v30  ;;  %v81_v34 = vadd.f32 %v79_v31, %v78_v28  ;;  %v85_v35 = vadd.f32 %v83_v29, %v72_v32  ;;  %v88_v36 = vmul.f32 %v72_v32, %v50_v4 }
  0x4f   :  { %82 = vst.msk [vmem:[#allocation3] sm:$0xff] %vm43_vm0, %v81_v34  ;;  %86 = vst.msk [vmem:[#allocation4] sm:$0xff] %vm43_vm0, %v85_v35  ;;  %v90_v38 = vadd.f32 %v88_v36, %v87_v33 }
  0x51   :  { %91 = vst.msk [vmem:[#allocation5] sm:$0xff] %vm43_vm0, %v90_v38 }
  0x54   :  { %v99_v40 = vld [vmem:[#allocation2] sm:$0xff] }
  0x55   :  { %v100_v41 = vsel %vm43_vm0, %v99_v40, 0.0 }
  0x56   :  { %v101_v43 = vrot.slane %v100_v41, 4  ;;  %v107_v44 = vld [vmem:[#allocation3] sm:$0xff]  ;;  %v115_v45 = vld [vmem:[#allocation4] sm:$0xff] }
  0x57   :  { %v108_v46 = vsel %vm43_vm0, %v107_v44, 0.0  ;;  %v116_v47 = vsel %vm43_vm0, %v115_v45, 0.0 }
  0x58   :  { %v102_v48 = vadd.f32 %v101_v43, %v100_v41  ;;  %v109_v49 = vrot.slane %v108_v46, 4  ;;  %v117_v50 = vrot.slane %v116_v47, 4  ;;  %v123_v51 = vld [vmem:[#allocation5] sm:$0xff] }
  0x59   :  { %v124_v52 = vsel %vm43_vm0, %v123_v51, 0.0 }
  0x5a   :  { %v103_v54 = vrot.slane %v102_v48, 2  ;;  %v110_v55 = vadd.f32 %v109_v49, %v108_v46  ;;  %v118_v56 = vadd.f32 %v117_v50, %v116_v47  ;;  %v125_v57 = vrot.slane %v124_v52, 4 }
  0x5c   :  { %v104_v58 = vadd.f32 %v103_v54, %v102_v48  ;;  %v111_v59 = vrot.slane %v110_v55, 2  ;;  %v119_v60 = vrot.slane %v118_v56, 2  ;;  %v126_v61 = vadd.f32 %v125_v57, %v124_v52 }
  0x5e   :  { %v105_v63 = vrot.slane %v104_v58, 1  ;;  %v112_v0 = vadd.f32 %v111_v59, %v110_v55  ;;  %v120_v1 = vadd.f32 %v119_v60, %v118_v56  ;;  %v127_v2 = vrot.slane %v126_v61, 2 }
  0x60   :  { %v113_v3 = vrot.slane %v112_v0, 1  ;;  %v121_v4 = vrot.slane %v120_v1, 1  ;;  %v128_v5 = vadd.f32 %v127_v2, %v126_v61  ;;  %v106_v8 = vadd.f32 %v105_v63, %v104_v58 }
  0x62   :  { %v114_v9 = vadd.f32 %v113_v3, %v112_v0  ;;  %v122_v10 = vadd.f32 %v121_v4, %v120_v1  ;;  %v129_v11 = vrot.slane %v128_v5, 1 }
  0x64   :  { %v130_v12 = vadd.f32 %v129_v11, %v128_v5  ;;  %v139_v13 = vmul.f32 0.125, %v114_v9  ;;  %v140_v14 = vsub.f32 %v106_v8, %v114_v9 }
  0x66   :  { %v141_v15 = vmul.f32 0.125, %v140_v14  ;;  %v143_v16 = vsub.f32 %v142_v7, %v139_v13  ;;  %v147_v18 = vsub.f32 %v122_v10, %v130_v12  ;;  %v146_v19 = vmul.f32 0.125, %v130_v12 }
  0x67   :  { %v149_v38 = vmul.f32 4.0, %v139_v13 }
  0x68   :  { %v145_v20 = vsub.f32 %v144_v17, %v141_v15  ;;  %v148_v21 = vmul.f32 0.125, %v147_v18  ;;  %v154_v22 = vadd.f32 %v143_v16, %v141_v15 }
  0x6a   :  { %v151_v23 = vmul.f32 4.0, %v145_v20  ;;  %v153_v24 = vadd.f32 %v145_v20, %v139_v13  ;;  %v158_v25 = vmul.f32 %v146_v19, %v145_v20  ;;  %v159_v28 = vmul.f32 %v148_v21, %v139_v13 }
  0x6b   :  { %v163_v29 = vsub.f32 %v154_v22, %v145_v20  ;;  %v162_v33 = vsub.f32 %v146_v19, %v148_v21  ;;  %v150_v40 = vmul.f32 %v149_v38, %v145_v20 }
  0x6c   :  { %v152_v26 = vmul.f32 %v151_v23, %v139_v13  ;;  %v155_v27 = vmul.f32 %v154_v22, %v153_v24  ;;  %v160_v32 = vsub.f32 %v158_v25, %v159_v28 }
  0x6d   :  { %v164_v34 = vsub.f32 %v163_v29, %v139_v13 }
  0x6e   :  { %v156_v30 = vadd.f32 %v155_v27, %v152_v26  ;;  %v161_v36 = vmul.f32 4.0, %v160_v32 }
  0x6f   :  { %v165_v37 = vmul.f32 %v164_v34, %v162_v33 }
  0x70   :  { %v157_v31 = vadd.f32 1e-12, %v156_v30 }
  0x71   :  { %v166_v39 = vadd.f32 %v165_v37, %v161_v36 }
  0x72   :  { %v170_v35 = vmul.f32 %v157_v31, %v157_v31  ;;  %v167_v41 = vmul.f32 %v161_v36, %v157_v31 }
  0x73   :  { %v168_v42 = vmul.f32 %v166_v39, %v150_v40 }
  0x74   :  { %203 = vrcp.f32 %v170_v35 }
  0x75   :  { %v169_v43 = vsub.f32 %v167_v41, %v168_v42 }
  0x81   :  { %v204_v44 = vpop.eup %203 }
  0x82   :  { %v172_v45 = vmul.f32 %v204_v44, %v169_v43 }
  0x84   :  { %v173_v46 = vmul.f32 0.0001, %v172_v45 }
  0x86   :  { %v174_v47 = vadd.f32 %v173_v46, %v309_v6 }
  0x88   :  { %v175_v48 = vmax.f32 %v174_v47, 0.2 }
  0x8a   :  { %v176_v49 = vmin.f32 %v175_v48, 0.8 }
  0x8c   :  { %178 = vst.msk [vmem:[#allocation12] sm:$0x1] %vm177_vm1, %v176_v49 }
  0x8d   :  { %256 = shalt.err (!%p253_p0)
}
  0x8e   :  { %188 = dma.vmem_to_hbm [thread:$0]  %s186_s22, 16, %s329_s3, [#allocation9]  }
  0x8f   :  { %269 = dma.done.wait [#allocation9], 16  }
  0x90   :  { %270 = vsyncadd [#allocation9], 4294967280 }
  0x91   :  { %192 = vsyncpa [#allocation8], 1 }
  0x92   :  { %193 = vsyncpa [#allocation11], 1 }
  0x93   :  { %194 = vsyncpa [#allocation9], 1 }

</bundles_post_ra>
